<compile_context>
chip_gen: v5e
topology: v5e:2x2
jax: 0.10.0
libtpu: 0.0.40
codegen_flags: <defaults>
</compile_context>

<pallas_src>
import jax
import jax.numpy as jnp
from jax.experimental import pallas as pl
from jax.experimental.pallas import tpu as pltpu

EMB_DIM = 200     # English embedding dim (Linear(200, 100) input)
HID_DIM = 100     # hidden dim
EMB_PAD = 256     # padded embedding dim (multiple of 128)
HID_PAD = 128     # padded hidden dim (multiple of 128)
NEG_SLOPE = 0.01  # nn.LeakyReLU default


def _round_up(x, m):
    return (x + m - 1) // m * m


def enzh_kernel(emb_ref, w1_ref, b1_ref, w2d_ref, brow_ref, out_ref, h_ref):
    """One (row-tile, vocab-tile) block.

    emb_ref : (TN, 256)  bf16  gathered+padded English embeddings (keyed on i)
    w1_ref  : (256, 128) bf16  padded Linear1 weight (transposed), constant
    b1_ref  : (1, 128)   f32   padded Linear1 bias, constant
    w2d_ref : (128, TV)  bf16  padded fused (Linear2 @ decoder) weight (keyed on j)
    brow_ref: (1, TV)    f32   fused bias row = b2 @ decoder + scalar bias (keyed on j)
    out_ref : (TN, TV)   f32
    h_ref   : (TN, 128)  bf16  VMEM scratch: hidden activations, reused across j
    """
    j = pl.program_id(1)

    # Compute the MLP hidden state once per row tile, reuse for all vocab tiles.
    @pl.when(j == 0)
    def _():
        h = jnp.dot(emb_ref[...], w1_ref[...], preferred_element_type=jnp.float32)
        h = h + b1_ref[...]
        h = jnp.where(h >= 0.0, h, NEG_SLOPE * h)            # LeakyReLU(0.01)
        h_ref[...] = h.astype(h_ref.dtype)

    # (TN, 128) @ (128, TV) on the MXU, f32 accumulation, fused bias add.
    y = jnp.dot(h_ref[...], w2d_ref[...], preferred_element_type=jnp.float32)
    out_ref[...] = y + brow_ref[...]


def enzh_forward(text, emb_table, w1t, b1, w2t, b2, decoder, bias,
                 *, row_tile=256, vocab_tile=512):
    """text: (B, S) int32 indices into emb_table (en_vocab, 200)."""
    B, S = text.shape
    N = B * S
    V = decoder.shape[1]

    # ---- algebraic fold of Linear2 into the decoder (exact in real arithmetic):
    #      (h @ W2t + b2) @ D + bias  ==  h @ (W2t @ D) + (b2 @ D + bias)
    dec_f32 = decoder.astype(jnp.float32)
    w2d = w2t.astype(jnp.float32) @ dec_f32                         # (100, V)
    bias_row = b2.astype(jnp.float32) @ dec_f32 + bias[0, 0]        # (1, V)

    # ---- pad inner dims to lane/MXU-friendly sizes (zeros preserve the math)
    w1t_p = jnp.pad(w1t, ((0, EMB_PAD - EMB_DIM), (0, HID_PAD - HID_DIM))
                    ).astype(jnp.bfloat16)                          # (256, 128)
    b1_p = jnp.pad(b1, ((0, 0), (0, HID_PAD - HID_DIM))).astype(jnp.float32)  # (1, 128)
    w2d_p = jnp.pad(w2d, ((0, HID_PAD - HID_DIM), (0, 0)))          # (128, V)

    # ---- tile sizes (clamped so tiny demo problems stay tiny)
    tn = min(row_tile, _round_up(N, 8))
    n_pad = _round_up(N, tn)
    tv = min(vocab_tile, _round_up(V, 128))
    v_pad = _round_up(V, tv)

    w2d_p = jnp.pad(w2d_p, ((0, 0), (0, v_pad - V))).astype(jnp.bfloat16)       # (128, Vp)
    bias_row_p = jnp.pad(bias_row, ((0, 0), (0, v_pad - V))).astype(jnp.float32)  # (1, Vp)

    # ---- frozen-embedding gather (pure indexing) + pad + bf16 for the MXU
    # TODO(synk): fuse this gather into the pipeline (scalar-prefetch `text` +
    # pl.Element row-gather on emb_table) to remove the extra (N, 200) HBM
    # round trip once N is large enough for it to matter.
    emb_p = jnp.pad(emb_table, ((0, 0), (0, EMB_PAD - EMB_DIM)))
    eng = emb_p[text.reshape(-1)]                                   # (N, 256)
    eng = jnp.pad(eng, ((0, n_pad - N), (0, 0))).astype(jnp.bfloat16)

    grid = (n_pad // tn, v_pad // tv)

    out = pl.pallas_call(
        enzh_kernel,
        out_shape=jax.ShapeDtypeStruct((n_pad, v_pad), jnp.float32),
        grid_spec=pltpu.PrefetchScalarGridSpec(
            num_scalar_prefetch=0,
            grid=grid,
            in_specs=[
                pl.BlockSpec((tn, EMB_PAD), lambda i, j: (i, 0)),     # embeddings tile
                pl.BlockSpec((EMB_PAD, HID_PAD), lambda i, j: (0, 0)),  # W1^T (constant)
                pl.BlockSpec((1, HID_PAD), lambda i, j: (0, 0)),      # b1 (constant)
                pl.BlockSpec((HID_PAD, tv), lambda i, j: (0, j)),     # fused W2@D tile
                pl.BlockSpec((1, tv), lambda i, j: (0, j)),           # fused bias row tile
            ],
            out_specs=pl.BlockSpec((tn, tv), lambda i, j: (i, j)),
            scratch_shapes=[pltpu.VMEM((tn, HID_PAD), jnp.bfloat16)],  # hidden h
        ),
        compiler_params=pltpu.CompilerParams(
            # i (token rows) is fully independent -> shardable across v7x's 2 TCs.
            # j (vocab tiles) must be "arbitrary": the h scratch computed at
            # j == 0 is reused for the remaining vocab tiles of the same row tile.
            dimension_semantics=("parallel", "arbitrary"),
            vmem_limit_bytes=32 * 1024 * 1024,
        ),
    )(eng, w1t_p, b1_p, w2d_p, bias_row_p)

    return out[:N, :V].reshape(B, S, V)


def reference_forward(text, emb_table, w1t, b1, w2t, b2, decoder, bias):
    """Plain-JAX f32 reference matching the PyTorch module exactly."""
    eng_emb = emb_table[text]                                       # (B, S, 200)
    h = eng_emb @ w1t + b1                                          # (B, S, 100)
    h = jnp.where(h >= 0.0, h, NEG_SLOPE * h)
    z = h @ w2t + b2                                                # (B, S, 200)
    one_hot = z @ decoder                                           # (B, S, V)
    return one_hot + bias[0, 0]


if __name__ == "__main__":
    key = jax.random.PRNGKey(0)
    k_emb, k_dec, k_w1, k_b1, k_w2, k_b2, k_bias, k_text = jax.random.split(key, 8)

    B, S = 2, 8            # batch, sequence length
    EN_VOCAB = 50          # small synthetic English vocab
    ZH_VOCAB = 1024        # small synthetic Chinese vocab (2 vocab tiles of 512)

    # Deterministic synthetic "pretrained" parameters (shapes from __init__).
    emb_table = jax.random.normal(k_emb, (EN_VOCAB, EMB_DIM), jnp.float32) * 0.1
    decoder = jax.random.normal(k_dec, (EMB_DIM, ZH_VOCAB), jnp.float32) * 0.1
    # nn.Linear(200, 100): weight (100, 200) -> pass transposed (200, 100).
    w1t = jax.random.normal(k_w1, (EMB_DIM, HID_DIM), jnp.float32) * 0.05
    b1 = jax.random.normal(k_b1, (1, HID_DIM), jnp.float32) * 0.05
    # nn.Linear(100, 200): weight (200, 100) -> pass transposed (100, 200).
    w2t = jax.random.normal(k_w2, (HID_DIM, EMB_DIM), jnp.float32) * 0.05
    b2 = jax.random.normal(k_b2, (1, EMB_DIM), jnp.float32) * 0.05
    # self.bias = nn.Parameter(torch.FloatTensor(1, 1).uniform_(-1, 1))
    bias = jax.random.uniform(k_bias, (1, 1), jnp.float32, -1.0, 1.0)

    text = jax.random.randint(k_text, (B, S), 0, EN_VOCAB, jnp.int32)

    out = enzh_forward(text, emb_table, w1t, b1, w2t, b2, decoder, bias)
    out = jax.block_until_ready(out)

    ref = reference_forward(text, emb_table, w1t, b1, w2t, b2, decoder, bias)
    assert out.shape == (B, S, ZH_VOCAB)
    # bf16 matmul operands (f32 accumulation) -> slightly looser tolerance vs f32 ref.
    assert jnp.allclose(out, ref, atol=1e-2, rtol=1e-2), "mismatch vs reference"

    print("KERNEL_OK")
</pallas_src>

<mosaic_0001>
module attributes {stable_mosaic.version = 11 : i64} {
  func.func @enzh_kernel(%arg0: i32, %arg1: i32, %arg2: memref<16x256xbf16, #tpu.memory_space<vmem>>, %arg3: memref<256x128xbf16, #tpu.memory_space<vmem>>, %arg4: memref<1x128xf32, #tpu.memory_space<vmem>>, %arg5: memref<128x512xbf16, #tpu.memory_space<vmem>>, %arg6: memref<1x512xf32, #tpu.memory_space<vmem>>, %arg7: memref<16x512xf32, #tpu.memory_space<vmem>>, %arg8: memref<16x128xbf16, #tpu.memory_space<vmem>>) attributes {dimension_semantics = [#tpu.dimension_semantics<parallel>, #tpu.dimension_semantics<arbitrary>], iteration_bounds = array<i64: 1, 2>, scalar_prefetch = 0 : i64, scratch_operands = 1 : i64, tpu.core_type = #tpu.core_type<tc>, window_params = [{transform_indices = @transform_0, window_bounds = array<i64: 16, 256>}, {pipeline_mode = #tpu.pipeline_mode<synchronous>, transform_indices = @transform_1, window_bounds = array<i64: 256, 128>}, {pipeline_mode = #tpu.pipeline_mode<synchronous>, transform_indices = @transform_2, window_bounds = array<i64: 1, 128>}, {transform_indices = @transform_3, window_bounds = array<i64: 128, 512>}, {transform_indices = @transform_4, window_bounds = array<i64: 1, 512>}, {transform_indices = @transform_5, window_bounds = array<i64: 16, 512>}]} {
    %c0_i32 = arith.constant 0 : i32
    %0 = arith.cmpi eq, %arg1, %c0_i32 : i32
    %1 = arith.extui %0 : i1 to i32
    %c0_i32_0 = arith.constant 0 : i32
    %2 = arith.cmpi ne, %1, %c0_i32_0 : i32
    scf.if %2 {
      %c0_8 = arith.constant 0 : index
      %c0_9 = arith.constant 0 : index
      %10 = vector.load %arg2[%c0_8, %c0_9] : memref<16x256xbf16, #tpu.memory_space<vmem>>, vector<16x256xbf16>
      %c0_10 = arith.constant 0 : index
      %c0_11 = arith.constant 0 : index
      %11 = vector.load %arg3[%c0_10, %c0_11] : memref<256x128xbf16, #tpu.memory_space<vmem>>, vector<256x128xbf16>
      %cst_12 = arith.constant dense<0.000000e+00> : vector<16x128xf32>
      %12 = tpu.matmul %10, %11, %cst_12 {dimension_numbers = #tpu.dot_dimension_numbers<[1], [0], [0], [1], [0, 0, 1, 1], [], []>} : vector<16x256xbf16>, vector<256x128xbf16>, vector<16x128xf32> -> vector<16x128xf32>
      %c0_13 = arith.constant 0 : index
      %c0_14 = arith.constant 0 : index
      %13 = vector.load %arg4[%c0_13, %c0_14] : memref<1x128xf32, #tpu.memory_space<vmem>>, vector<1x128xf32>
      %14 = vector.broadcast %13 : vector<1x128xf32> to vector<16x128xf32>
      %15 = arith.addf %12, %14 : vector<16x128xf32>
      %cst_15 = arith.constant 0.000000e+00 : f32
      %16 = vector.broadcast %cst_15 : f32 to vector<16x128xf32>
      %17 = arith.cmpf oge, %15, %16 : vector<16x128xf32>
      %cst_16 = arith.constant 0.00999999977 : f32
      %18 = vector.broadcast %cst_16 : f32 to vector<16x128xf32>
      %19 = arith.mulf %18, %15 : vector<16x128xf32>
      %20 = arith.select %17, %15, %19 : vector<16x128xi1>, vector<16x128xf32>
      %21 = arith.truncf %20 : vector<16x128xf32> to vector<16x128xbf16>
      %c0_17 = arith.constant 0 : index
      %c0_18 = arith.constant 0 : index
      %22 = vector.load %arg8[%c0_17, %c0_18] : memref<16x128xbf16, #tpu.memory_space<vmem>>, vector<16x128xbf16>
      tpu.vector_store %arg8[%c0_17, %c0_18], %21 {strides = array<i32>} : memref<16x128xbf16, #tpu.memory_space<vmem>>, vector<16x128xbf16>,
    } else {
    }
    %c0 = arith.constant 0 : index
    %c0_1 = arith.constant 0 : index
    %3 = vector.load %arg8[%c0, %c0_1] : memref<16x128xbf16, #tpu.memory_space<vmem>>, vector<16x128xbf16>
    %c0_2 = arith.constant 0 : index
    %c0_3 = arith.constant 0 : index
    %4 = vector.load %arg5[%c0_2, %c0_3] : memref<128x512xbf16, #tpu.memory_space<vmem>>, vector<128x512xbf16>
    %cst = arith.constant dense<0.000000e+00> : vector<16x512xf32>
    %5 = tpu.matmul %3, %4, %cst {dimension_numbers = #tpu.dot_dimension_numbers<[1], [0], [0], [1], [0, 0, 1, 1], [], []>} : vector<16x128xbf16>, vector<128x512xbf16>, vector<16x512xf32> -> vector<16x512xf32>
    %c0_4 = arith.constant 0 : index
    %c0_5 = arith.constant 0 : index
    %6 = vector.load %arg6[%c0_4, %c0_5] : memref<1x512xf32, #tpu.memory_space<vmem>>, vector<1x512xf32>
    %7 = vector.broadcast %6 : vector<1x512xf32> to vector<16x512xf32>
    %8 = arith.addf %5, %7 : vector<16x512xf32>
    %c0_6 = arith.constant 0 : index
    %c0_7 = arith.constant 0 : index
    %9 = vector.load %arg7[%c0_6, %c0_7] : memref<16x512xf32, #tpu.memory_space<vmem>>, vector<16x512xf32>
    tpu.vector_store %arg7[%c0_6, %c0_7], %8 {strides = array<i32>} : memref<16x512xf32, #tpu.memory_space<vmem>>, vector<16x512xf32>,
    return
  }
  func.func @transform_0(%arg0: i32, %arg1: i32) -> (i32, i32) {
    %c0_i32 = arith.constant 0 : i32
    %c0_i32_0 = arith.constant 0 : i32
    return %arg0, %c0_i32 : i32, i32
  }
  func.func @transform_1(%arg0: i32, %arg1: i32) -> (i32, i32) {
    %c0_i32 = arith.constant 0 : i32
    %c0_i32_0 = arith.constant 0 : i32
    %c0_i32_1 = arith.constant 0 : i32
    return %c0_i32, %c0_i32_0 : i32, i32
  }
  func.func @transform_2(%arg0: i32, %arg1: i32) -> (i32, i32) {
    %c0_i32 = arith.constant 0 : i32
    %c0_i32_0 = arith.constant 0 : i32
    %c0_i32_1 = arith.constant 0 : i32
    return %c0_i32, %c0_i32_0 : i32, i32
  }
  func.func @transform_3(%arg0: i32, %arg1: i32) -> (i32, i32) {
    %c0_i32 = arith.constant 0 : i32
    %c0_i32_0 = arith.constant 0 : i32
    return %c0_i32, %arg1 : i32, i32
  }
  func.func @transform_4(%arg0: i32, %arg1: i32) -> (i32, i32) {
    %c0_i32 = arith.constant 0 : i32
    %c0_i32_0 = arith.constant 0 : i32
    return %c0_i32, %arg1 : i32, i32
  }
  func.func @transform_5(%arg0: i32, %arg1: i32) -> (i32, i32) {
    %c0_i32 = arith.constant 0 : i32
    return %arg0, %arg1 : i32, i32
  }
}

</mosaic_0001>

<bundles_post_ra>
// kernel: tpu_custom_call.1
= control target key start
LH: loop header
LB: loop body
LE: loop exit
PB: predicated region body
PF: predicated region fallthrough
CT: control target
= control target key end

     0   :  { %s1845_s0 = inlined_call_operand.hbm [shape: bf16[16,256], index: 0, kind: input, shape index: {}]   ;;  %s1846_s1 = inlined_call_operand.hbm [shape: bf16[256,128], index: 1, kind: input, shape index: {}]   ;;  %s1847_s2 = inlined_call_operand.vmem [shape: f32[1,128], index: 2, kind: input, shape index: {}]   ;;  %s1848_s3 = inlined_call_operand.hbm [shape: bf16[128,1024], index: 3, kind: input, shape index: {}]   ;;  %s1849_s4 = inlined_call_operand.hbm [shape: f32[1,1024], index: 4, kind: input, shape index: {}]   ;;  %s1850_s5 = inlined_call_operand.hbm [shape: f32[16,1024], index: 5, kind: output, shape index: {}]  }
   0x1   :  { %1860 = sst [smem:[#allocation21_spill]] %s1845_s0 }
   0x2   :  { %1861 = sst [smem:[#allocation22_spill]] %s1846_s1 }
   0x3   :  { %1862 = sst [smem:[#allocation23_spill]] %s1848_s3 }
   0x4   :  { %1863 = sst [smem:[#allocation24_spill]] %s1850_s5 }
   0x5   :  { %10 = vsyncpa [#allocation4], 0 }
   0x6   :  { %11 = vsyncpa [#allocation7], 0 }
   0x7   :  { %12 = vsyncpa [#allocation5], 0 }
   0x8   :  { %14 = vsyncpa [#allocation5 + $0x1], 0  ;;  %s1582_s18 = smov 0   ;;  %s1584_s19 = smov 0  }
   0x9   :  { %s1586_s20 = smov 0   ;;  %s1588_s21 = smov 0  }
   0xa   :  { %s1590_s22 = smov 0   ;;  %s1592_s23 = smov 0  }
   0xb LB: > { %1864 = sst [smem:[#allocation15_spill]] %s1518_s18  ;;  %s1613_s24 = sadd.s32 4294967295, %s1538_s23   ;;  %s1538_s23 = sphi %s1592_s23, %s20_s23   ;;  %s1534_s22 = sphi %s1590_s22, %s1893_s22   ;;  %s1530_s21 = sphi %s1588_s21, %s1892_s21   ;;  %s1526_s20 = sphi %s1586_s20, %s1891_s20   ;;  %s1522_s19 = sphi %s1584_s19, %s1890_s19   ;;  %s1518_s18 = sphi %s1582_s18, %s1889_s18  }
   0xc   : > { %1865 = sst [smem:[#allocation16_spill]] %s1538_s23  ;;  %s945_s25 = sadd.s32 4294967294, %s1538_s23  }
   0xd   : > { %p114_p0 = scmp.ne.s32.totalorder %s1526_s20, %s1522_s19  ;;  %p115_p1 = scmp.eq.s32.totalorder %s1538_s23, 0 }
   0xe   : > { %p120_p2 = scmp.ne.s32.totalorder %s1522_s19, %s1518_s18  ;;  %p121_p3 = scmp.eq.s32.totalorder %s1613_s24, 0 }
   0xf   : > { %p172_p4 = scmp.eq.s32.totalorder %s1613_s24, 1  ;;  %p1624_p5 = por %p115_p1, %p114_p0 }
  0x10   : > { %p178_p6 = scmp.eq.s32.totalorder %s945_s25, 1  ;;  %p1630_p7 = por %p121_p3, %p120_p2 }
  0x11   : > { %p1634_p8 = por %p172_p4, %p114_p0  ;;  %p946_p10 = scmp.ge.s32.totalorder %s1538_s23, 1 }
  0x12   : > { %p1638_p9 = por %p178_p6, %p120_p2  ;;  %p185_p11 = scmp.lt.s32.totalorder %s1538_s23, 3 }
  0x13   : > { %s1868_s29 = scalar_select %p1634_p8, 1, 0 }
  0x14   : > { %s1870_s30 = scalar_select %p1638_p9, 1, 0 }
  0x15   : > { %1869 = sst [smem:[#allocation17_spill]] %s1868_s29  ;;  %p1647_p12 = pnand %p946_p10, %p185_p11 }
  0x16   : > { %1871 = sst [smem:[#allocation18_spill]] %s1870_s30  ;;  %s1540_s10 = smov [#allocation3]  }
  0x17   : > { %s1872_s0 = sld [smem:[#allocation21_spill]]  ;;  %s202_s11 = sshll.u32 %s1540_s10, 4  ;;  %s203_s11 = int_to_ptr.vmem [resolvable:$true] %s202_s11 }
  0x18   : > { %p1243_p13 = pneg %p1647_p12  ;;  %p949_p0 = scmp.ge.s32.totalorder %s1538_s23, 2 }
  0x19   : > { %p1263_p2 = scmp.lt.s32.totalorder %s1538_s23, 2  ;;  %s233_s13 = sand.u32 1, %s1538_s23  }
  0x1a   : > { %p1656_p1 = pnand %p1243_p13, %p121_p3  ;;  %s1541_s15 = smov 128  }
  0x1b   : > { %p1664_p4 = pnand %p1263_p2, %p1624_p5  ;;  %s1542_s16 = smov 8  }
  0x1c   : > { %s29_s17 = sadd.s32 1, %s1534_s22  ;;  %s1854_s25 = sand.u32 1, %s1526_s20  }
  0x1d   : > { %s200_s8 = sshll.u32 %s1872_s0, 4  ;;  %p30_p6 = scmp.ge.s32.totalorder %s29_s17, 2  ;;  %s201_s8 = int_to_ptr.hbm [resolvable:$true] %s200_s8 }
  0x1e   : > { %1246 = dma.hbm_to_vmem [thread:$0]  (!%p1656_p1), %s201_s8, 256, %s203_s11, [#allocation4], %s1541_s15, %s1541_s15, %s1542_s16  }
  0x1f   : > { %s950_s6 = sshll.u32 %s1854_s25, 8  ;;  %s1171_s7 = sshll.u32 %s1534_s22, 4 }
  0x20   : > { %s1895_s17 = smov (%p30_p6, %s29_s17), 0  ;;  %s1877_s3 = sld [smem:[#allocation23_spill]] }
  0x21   : > { %1876 = sst [smem:[#allocation19_spill]] %s1895_s17  ;;  %s104_s0 = ssub.s32 %s1534_s22, %s1895_s17 }
  0x22   : > { %p105_p5 = scmp.eq.s32.totalorder %s104_s0, 0  ;;  %s237_s30 = scalar_lea.vmem [#allocation8], %s950_s6 }
  0x23   : > { %s245_s8 = sshll.u32 %s237_s30, 4  ;;  %s1878_s11 = sadd.s32 1, %s1526_s20  ;;  %s246_s8 = int_to_ptr.vmem [resolvable:$true] %s245_s8 }
  0x24   : > { %s1685_s15 = scalar_select %p105_p5, %s1526_s20, %s1878_s11  }
  0x25   : > { %s1880_s1 = sld [smem:[#allocation22_spill]]  ;;  %s234_s27 = scalar_lea.sflag [#allocation4], %s233_s13 }
  0x26   : > { %s242_s26 = scalar_lea.hbm %s1877_s3, %s1171_s7  ;;  %1879 = sst [smem:[#allocation20_spill]] %s1685_s15 }
  0x27   : > { %s243_s23 = sshll.u32 %s242_s26, 4  ;;  %s1543_s10 = smov 512   ;;  %s244_s23 = int_to_ptr.hbm [resolvable:$true] %s243_s23 }
  0x28   : > { %s1544_s7 = smov 256   ;;  %s1545_s3 = smov 16  }
  0x29   : > { %1253 = dma.hbm_to_vmem [thread:$0]  (!%p1664_p4), %s244_s23, 4096, %s246_s8, %s234_s27, %s1543_s10, %s1544_s7, %s1545_s3  }
  0x2a   : > { %s1546_s0 = smov [#allocation6]   ;;  %s1547_s30 = smov 64  }
  0x2b   : > { %s214_s18 = sshll.u32 %s1880_s1, 4  ;;  %s216_s26 = sshll.u32 %s1546_s0, 4  ;;  %s215_s18 = int_to_ptr.hbm [resolvable:$true] %s214_s18  ;;  %s217_s26 = int_to_ptr.vmem [resolvable:$true] %s216_s26 }
  0x2c   : > { %s1548_s6 = smov 4   ;;  %s1881_s11 = sand.u32 1, %s1526_s20  }
  0x2d   : > { %1249 = dma.hbm_to_vmem [thread:$0]  (!%p1656_p1), %s215_s18, 2048, %s217_s26, [#allocation7], %s1547_s30, %s1547_s30, %s1548_s6  }
  0x2e   : > { %s953_s17 = sshll.u32 %s1881_s11, 2  ;;  %s954_s15 = sshll.u32 %s1534_s22, 2 }
  0x2f   : > { %s263_s13 = scalar_lea.hbm %s1849_s4, %s954_s15  ;;  %s259_s29 = scalar_lea.vmem [#allocation9], %s953_s17 }
  0x30   : > { %s265_s1 = sshll.u32 %s263_s13, 4  ;;  %s267_s5 = sshll.u32 %s259_s29, 4  ;;  %s266_s1 = int_to_ptr.hbm [resolvable:$true] %s265_s1  ;;  %s268_s5 = int_to_ptr.vmem [resolvable:$true] %s267_s5 }
  0x31   : > { %1256 = dma.hbm_to_vmem [thread:$0]  (!%p1664_p4), %s266_s1, 64, %s268_s5, %s234_s27  }
  0x32   : > { %276 = sbr.rel (%p1647_p12) target bundleno = 430 (0x1ae), region = 40 }
  0x37   : > { %1501 = dma.done.wait (%p121_p3), [#allocation4], 256  }
  0x38   : > { %1503 = vsyncadd (%p121_p3), [#allocation4], 4294967040 }
  0x39   : > { %1505 = dma.done.wait (%p121_p3), [#allocation7], 2048  }
  0x3a   : > { %1507 = vsyncadd (%p121_p3), [#allocation7], 4294965248  ;;  %s288_s3 = sand.u32 1, %s1613_s24   ;;  %s1714_s1 = sand.u32 1, %s1522_s19  }
  0x3b   : > { %s958_s5 = sshll.u32 %s1714_s1, 8  ;;  %s289_s18 = scalar_lea.sflag [#allocation4], %s288_s3 }
  0x3c   : > { %s1717_s23 = scalar_lea.vmem [#allocation8], %s958_s5 }
  0x3d   : > { %1509 = dma.done.wait (%p1630_p7), %s289_s18, 4160  }
  0x3e   : > { %1511 = vsyncadd (%p1630_p7), %s289_s18, 4294963136  ;;  %s959_s29 = sshll.u32 %s1714_s1, 2  ;;  %s960_s9 = sshll.u32 %s1714_s1, 6 }
  0x3f   : > { %s1725_s12 = scalar_lea.vmem [#allocation9], %s959_s29  ;;  %s1727_s14 = scalar_lea.vmem [#allocation10], %s960_s9 }
  0x40   : > { %p961_p3 = scmp.ne.s32.totalorder %s1530_s21, 0 }
  0x42   : > { %343 = sbr.rel (%p961_p3) target bundleno = 247 (0xf7), region = 60 }
  0x47   : > { %v1181_v0 = vld [vmem:[#allocation6 + $0x38] sm:$0xff]  ;;  %v1180_v2 = vld [vmem:[#allocation6 + $0x30] sm:$0xff]  ;;  %v1179_v4 = vld [vmem:[#allocation6 + $0x28] sm:$0xff] }
  0x48   : > { %v1189_v1 = vld [vmem:[#allocation6 + $0x78] sm:$0xff]  ;;  %488 = vmatpush.bf16.msra.mxu0 %v1181_v0  ;;  %v1188_v3 = vld [vmem:[#allocation6 + $0x70] sm:$0xff]  ;;  %v1187_v5 = vld [vmem:[#allocation6 + $0x68] sm:$0xff] }
  0x49   : > { %502 = vmatpush.bf16.msra.mxu1 %v1189_v1  ;;  %v1178_v6 = vld [vmem:[#allocation6 + $0x20] sm:$0xff]  ;;  %v1177_v8 = vld [vmem:[#allocation6 + $0x18] sm:$0xff]  ;;  %v1176_v10 = vld [vmem:[#allocation6 + $0x10] sm:$0xff] }
  0x4a   : > { %v1186_v7 = vld [vmem:[#allocation6 + $0x60] sm:$0xff]  ;;  %v1185_v9 = vld [vmem:[#allocation6 + $0x58] sm:$0xff]  ;;  %v1184_v11 = vld [vmem:[#allocation6 + $0x50] sm:$0xff] }
  0x4b   : > { %v1175_v12 = vld [vmem:[#allocation6 + $0x8] sm:$0xff]  ;;  %v1174_v14 = vld [vmem:[#allocation6] sm:$0xff]  ;;  %v964_v16 = vld [vmem:[#allocation3] sm:$0xf] }
  0x4c   : > { %489 = vmatpush.bf16.msra.mxu0 %v1180_v2  ;;  %v1183_v13 = vld [vmem:[#allocation6 + $0x48] sm:$0xff]  ;;  %v1182_v15 = vld [vmem:[#allocation6 + $0x40] sm:$0xff]  ;;  %v1173_v17 = vld [vmem:[#allocation3 + $0x4] sm:$0xf0] }
  0x4d   : > { %503 = vmatpush.bf16.msra.mxu1 %v1188_v3  ;;  %v1172_v18 = vld [vmem:[#allocation3 + $0x4] sm:$0xf]  ;;  %v966_v19 = vld [vmem:[#allocation3 + $0x8] sm:$0xf0]  ;;  %v965_v20 = vor.u32 %v1173_v17, %v964_v16  ;;  %v1327_v22 = vld [vmem:[%s1847_s2] ss:$0 sm:$0xff] }
  0x4e   : > { %v969_v21 = vor.u32 %v1172_v18, %v966_v19 }
  0x50   : > { %490 = vmatpush.bf16.msra.mxu0 %v1179_v4 }
  0x51   : > { %504 = vmatpush.bf16.msra.mxu1 %v1187_v5 }
  0x54   : > { %491 = vmatpush.bf16.msra.mxu0 %v1178_v6 }
  0x55   : > { %505 = vmatpush.bf16.msra.mxu1 %v1186_v7 }
  0x58   : > { %492 = vmatpush.bf16.msra.mxu0 %v1177_v8 }
  0x59   : > { %506 = vmatpush.bf16.msra.mxu1 %v1185_v9 }
  0x5c   : > { %493 = vmatpush.bf16.msra.mxu0 %v1176_v10 }
  0x5d   : > { %507 = vmatpush.bf16.msra.mxu1 %v1184_v11 }
  0x60   : > { %494 = vmatpush.bf16.msra.mxu0 %v1175_v12 }
  0x61   : > { %508 = vmatpush.bf16.msra.mxu1 %v1183_v13 }
  0x64   : > { %495 = vmatpush.bf16.msra.mxu0 %v1174_v14 }
  0x65   : > { %509 = vmatpush.bf16.msra.mxu1 %v1182_v15 }
  0x67   : > { %496 = vmatmul.bf16.vlgmr.msra.gmra.mxu0 %v965_v20 }
  0x68   : > { %510 = vmatmul.bf16.vlgmr.msra.gmra.mxu1 %v969_v21 }
  0xe4   : > { %v497_v23 = vpop.f32.mrf.mxu0 }
  0xe5   : > { %v511_v24 = vpop.f32.mrf.mxu1  ;;  %v498_v25 = vadd.f32 %v1327_v22, %v497_v23 }
  0xe7   : > { %v512_v26 = vadd.f32 %v511_v24, %v498_v25 }
  0xe9   : > { %v518_v30 = vmul.f32 0.01, %v512_v26  ;;  %vm516_vm0 = vcmp.ge.f32.partialorder %v512_v26, 0.0 }
  0xeb   : > { %v520_v33 = vsel %vm516_vm0, %v512_v26, %v518_v30 }
  0xec   : > { %v499_v27 = vpop.f32.mrf.mxu0 }
  0xed   : > { %v500_v28 = vadd.f32 %v1327_v22, %v499_v27  ;;  %v513_v29 = vpop.f32.mrf.mxu1 }
  0xef   : > { %v514_v31 = vadd.f32 %v513_v29, %v500_v28 }
  0xf1   : > { %vm517_vm1 = vcmp.ge.f32.partialorder %v514_v31, 0.0  ;;  %v519_v32 = vmul.f32 0.01, %v514_v31 }
  0xf3   : > { %v521_v34 = vsel %vm517_vm1, %v514_v31, %v519_v32 }
  0xf4   : > { %v1227_v35 = vpack.c.bf16 %v521_v34, %v520_v33 }
  0xf6   : > { %1228 = vst [vmem:[#allocation2] sm:$0xff] %v1227_v35  }
  0xf7 PF: > { %v1152_v36 = vld [vmem:[%s1717_s23 + $0xe0] sm:$0xf]  ;;  %v1221_v37 = vld [vmem:[%s1717_s23 + $0xec] sm:$0xf0]  ;;  %v1219_v38 = vld [vmem:[%s1717_s23 + $0xe4] sm:$0xf] }
  0xf8   : > { %v1153_v39 = vor.u32 %v1221_v37, %v1152_v36  ;;  %v1154_v40 = vld [vmem:[%s1717_s23 + $0xf0] sm:$0xf0]  ;;  %v1160_v41 = vld [vmem:[%s1717_s23 + $0xe8] sm:$0xf]  ;;  %v1222_v42 = vld [vmem:[%s1717_s23 + $0xf4] sm:$0xf0] }
  0xf9   : > { %v1157_v43 = vor.u32 %v1219_v38, %v1154_v40  ;;  %v1161_v44 = vor.u32 %v1222_v42, %v1160_v41  ;;  %v1220_v45 = vld [vmem:[%s1717_s23 + $0xec] sm:$0xf]  ;;  %v1162_v46 = vld [vmem:[%s1717_s23 + $0xf8] sm:$0xf0]  ;;  %v1136_v47 = vld [vmem:[%s1717_s23 + $0xc0] sm:$0xf] }
  0xfa   : > { %736 = vmatpush.bf16.msra.mxu0 %v1153_v39  ;;  %v1165_v48 = vor.u32 %v1220_v45, %v1162_v46  ;;  %v1217_v49 = vld [vmem:[%s1717_s23 + $0xcc] sm:$0xf0]  ;;  %v1215_v50 = vld [vmem:[%s1717_s23 + $0xc4] sm:$0xf]  ;;  %v1138_v51 = vld [vmem:[%s1717_s23 + $0xd0] sm:$0xf0] }
  0xfb   : > { %750 = vmatpush.bf16.msra.mxu1 %v1157_v43  ;;  %764 = vmatpush.bf16.msra.mxu2 %v1161_v44  ;;  %v1137_v52 = vor.u32 %v1217_v49, %v1136_v47  ;;  %v1141_v53 = vor.u32 %v1215_v50, %v1138_v51  ;;  %v1144_v54 = vld [vmem:[%s1717_s23 + $0xc8] sm:$0xf]  ;;  %v1218_v55 = vld [vmem:[%s1717_s23 + $0xd4] sm:$0xf0]  ;;  %v1216_v56 = vld [vmem:[%s1717_s23 + $0xcc] sm:$0xf] }
  0xfc   : > { %778 = vmatpush.bf16.msra.mxu3 %v1165_v48  ;;  %v1145_v57 = vor.u32 %v1218_v55, %v1144_v54  ;;  %v1146_v58 = vld [vmem:[%s1717_s23 + $0xd8] sm:$0xf0]  ;;  %v1120_v59 = vld [vmem:[%s1717_s23 + $0xa0] sm:$0xf]  ;;  %v1213_v60 = vld [vmem:[%s1717_s23 + $0xac] sm:$0xf0] }
  0xfd   : > { %v1149_v61 = vor.u32 %v1216_v56, %v1146_v58  ;;  %v1211_v62 = vld [vmem:[%s1717_s23 + $0xa4] sm:$0xf]  ;;  %v1122_v63 = vld [vmem:[%s1717_s23 + $0xb0] sm:$0xf0]  ;;  %v1128_v0 = vld [vmem:[%s1717_s23 + $0xa8] sm:$0xf]  ;;  %v1121_v1 = vor.u32 %v1213_v60, %v1120_v59 }
  0xfe   : > { %737 = vmatpush.bf16.msra.mxu0 %v1137_v52  ;;  %v1214_v2 = vld [vmem:[%s1717_s23 + $0xb4] sm:$0xf0]  ;;  %v1212_v3 = vld [vmem:[%s1717_s23 + $0xac] sm:$0xf]  ;;  %v1130_v4 = vld [vmem:[%s1717_s23 + $0xb8] sm:$0xf0]  ;;  %v1125_v5 = vor.u32 %v1211_v62, %v1122_v63 }
  0xff   : > { %751 = vmatpush.bf16.msra.mxu1 %v1141_v53  ;;  %765 = vmatpush.bf16.msra.mxu2 %v1145_v57  ;;  %v1129_v6 = vor.u32 %v1214_v2, %v1128_v0  ;;  %v1104_v7 = vld [vmem:[%s1717_s23 + $0x80] sm:$0xf]  ;;  %v1209_v8 = vld [vmem:[%s1717_s23 + $0x8c] sm:$0xf0]  ;;  %v1207_v9 = vld [vmem:[%s1717_s23 + $0x84] sm:$0xf]  ;;  %v1133_v10 = vor.u32 %v1212_v3, %v1130_v4 }
 0x100   : > { %779 = vmatpush.bf16.msra.mxu3 %v1149_v61  ;;  %v1106_v11 = vld [vmem:[%s1717_s23 + $0x90] sm:$0xf0]  ;;  %v1112_v12 = vld [vmem:[%s1717_s23 + $0x88] sm:$0xf]  ;;  %v1210_v13 = vld [vmem:[%s1717_s23 + $0x94] sm:$0xf0]  ;;  %v1105_v16 = vor.u32 %v1209_v8, %v1104_v7 }
 0x101   : > { %v1208_v14 = vld [vmem:[%s1717_s23 + $0x8c] sm:$0xf]  ;;  %v1114_v15 = vld [vmem:[%s1717_s23 + $0x98] sm:$0xf0]  ;;  %v1109_v17 = vor.u32 %v1207_v9, %v1106_v11  ;;  %v1113_v18 = vor.u32 %v1210_v13, %v1112_v12  ;;  %v1088_v19 = vld [vmem:[%s1717_s23 + $0x60] sm:$0xf] }
 0x102   : > { %738 = vmatpush.bf16.msra.mxu0 %v1121_v1  ;;  %v1205_v20 = vld [vmem:[%s1717_s23 + $0x6c] sm:$0xf0]  ;;  %v1203_v21 = vld [vmem:[%s1717_s23 + $0x64] sm:$0xf]  ;;  %v1117_v22 = vor.u32 %v1208_v14, %v1114_v15  ;;  %v1090_v23 = vld [vmem:[%s1717_s23 + $0x70] sm:$0xf0] }
 0x103   : > { %752 = vmatpush.bf16.msra.mxu1 %v1125_v5  ;;  %766 = vmatpush.bf16.msra.mxu2 %v1129_v6  ;;  %v1096_v24 = vld [vmem:[%s1717_s23 + $0x68] sm:$0xf]  ;;  %v1206_v25 = vld [vmem:[%s1717_s23 + $0x74] sm:$0xf0]  ;;  %v1204_v26 = vld [vmem:[%s1717_s23 + $0x6c] sm:$0xf]  ;;  %v1089_v28 = vor.u32 %v1205_v20, %v1088_v19  ;;  %v1093_v29 = vor.u32 %v1203_v21, %v1090_v23 }
 0x104   : > { %780 = vmatpush.bf16.msra.mxu3 %v1133_v10  ;;  %v1098_v27 = vld [vmem:[%s1717_s23 + $0x78] sm:$0xf0]  ;;  %v1097_v30 = vor.u32 %v1206_v25, %v1096_v24  ;;  %v1072_v31 = vld [vmem:[%s1717_s23 + $0x40] sm:$0xf]  ;;  %v1201_v32 = vld [vmem:[%s1717_s23 + $0x4c] sm:$0xf0] }
 0x105   : > { %v1199_v33 = vld [vmem:[%s1717_s23 + $0x44] sm:$0xf]  ;;  %v1101_v34 = vor.u32 %v1204_v26, %v1098_v27  ;;  %v1074_v35 = vld [vmem:[%s1717_s23 + $0x50] sm:$0xf0]  ;;  %v1080_v36 = vld [vmem:[%s1717_s23 + $0x48] sm:$0xf]  ;;  %v1073_v40 = vor.u32 %v1201_v32, %v1072_v31 }
 0x106   : > { %739 = vmatpush.bf16.msra.mxu0 %v1105_v16  ;;  %v1202_v37 = vld [vmem:[%s1717_s23 + $0x54] sm:$0xf0]  ;;  %v1200_v38 = vld [vmem:[%s1717_s23 + $0x4c] sm:$0xf]  ;;  %v1082_v39 = vld [vmem:[%s1717_s23 + $0x58] sm:$0xf0]  ;;  %v1077_v41 = vor.u32 %v1199_v33, %v1074_v35 }
 0x107   : > { %753 = vmatpush.bf16.msra.mxu1 %v1109_v17  ;;  %767 = vmatpush.bf16.msra.mxu2 %v1113_v18  ;;  %v1081_v42 = vor.u32 %v1202_v37, %v1080_v36  ;;  %v1056_v43 = vld [vmem:[%s1717_s23 + $0x20] sm:$0xf]  ;;  %v1197_v44 = vld [vmem:[%s1717_s23 + $0x2c] sm:$0xf0]  ;;  %v1195_v45 = vld [vmem:[%s1717_s23 + $0x24] sm:$0xf]  ;;  %v1085_v46 = vor.u32 %v1200_v38, %v1082_v39 }
 0x108   : > { %781 = vmatpush.bf16.msra.mxu3 %v1117_v22  ;;  %v1058_v47 = vld [vmem:[%s1717_s23 + $0x30] sm:$0xf0]  ;;  %v1064_v48 = vld [vmem:[%s1717_s23 + $0x28] sm:$0xf]  ;;  %v1198_v49 = vld [vmem:[%s1717_s23 + $0x34] sm:$0xf0]  ;;  %v1057_v52 = vor.u32 %v1197_v44, %v1056_v43 }
 0x109   : > { %v1196_v50 = vld [vmem:[%s1717_s23 + $0x2c] sm:$0xf]  ;;  %v1066_v51 = vld [vmem:[%s1717_s23 + $0x38] sm:$0xf0]  ;;  %v1061_v53 = vor.u32 %v1195_v45, %v1058_v47  ;;  %v1065_v54 = vor.u32 %v1198_v49, %v1064_v48  ;;  %v1040_v55 = vld [vmem:[%s1717_s23] sm:$0xf] }
 0x10a   : > { %740 = vmatpush.bf16.msra.mxu0 %v1089_v28  ;;  %v1193_v56 = vld [vmem:[%s1717_s23 + $0xc] sm:$0xf0]  ;;  %v1191_v57 = vld [vmem:[%s1717_s23 + $0x4] sm:$0xf]  ;;  %v1069_v58 = vor.u32 %v1196_v50, %v1066_v51  ;;  %v1042_v59 = vld [vmem:[%s1717_s23 + $0x10] sm:$0xf0] }
 0x10b   : > { %754 = vmatpush.bf16.msra.mxu1 %v1093_v29  ;;  %768 = vmatpush.bf16.msra.mxu2 %v1097_v30  ;;  %v1048_v60 = vld [vmem:[%s1717_s23 + $0x8] sm:$0xf]  ;;  %v1194_v61 = vld [vmem:[%s1717_s23 + $0x14] sm:$0xf0]  ;;  %v1192_v62 = vld [vmem:[%s1717_s23 + $0xc] sm:$0xf]  ;;  %v1041_v0 = vor.u32 %v1193_v56, %v1040_v55  ;;  %v1045_v1 = vor.u32 %v1191_v57, %v1042_v59 }
 0x10c   : > { %782 = vmatpush.bf16.msra.mxu3 %v1101_v34  ;;  %v1050_v63 = vld [vmem:[%s1717_s23 + $0x18] sm:$0xf0]  ;;  %v1049_v2 = vor.u32 %v1194_v61, %v1048_v60  ;;  %v1190_v4 = vld [vmem:[#allocation2] sm:$0xff]  ;;  %v560_v5 = vld [vmem:[%s1725_s12] sm:$0xf]  ;;  %s1223_s17 = sshll.u32 %s1530_s21, 5 }
 0x10d   : > { %v1053_v3 = vor.u32 %v1192_v62, %v1050_v63  ;;  %v562_v6 = vperm.slane %v560_v5, 0  ;;  %v563_v7 = vperm.slane %v560_v5, 1  ;;  %v564_v12 = vperm.slane %v560_v5, 2  ;;  %s1882_s27 = sld [smem:[#allocation24_spill]]  ;;  %s816_s7 = sshll.u32 %s1727_s14, 4  ;;  %s817_s7 = int_to_ptr.vmem [resolvable:$true] %s816_s7 }
 0x10e   : > { %741 = vmatpush.bf16.msra.mxu0 %v1073_v40  ;;  %v565_v13 = vperm.slane %v560_v5, 3  ;;  %s801_s26 = scalar_lea.sflag [#allocation5], %s1714_s1 }
 0x10f   : > { %755 = vmatpush.bf16.msra.mxu1 %v1077_v41  ;;  %769 = vmatpush.bf16.msra.mxu2 %v1081_v42 }
 0x110   : > { %783 = vmatpush.bf16.msra.mxu3 %v1085_v46 }
 0x112   : > { %742 = vmatpush.bf16.msra.mxu0 %v1057_v52 }
 0x113   : > { %756 = vmatpush.bf16.msra.mxu1 %v1061_v53  ;;  %770 = vmatpush.bf16.msra.mxu2 %v1065_v54  ;;  %s815_s10 = scalar_lea.hbm %s1882_s27, %s1223_s17  ;;  %s1468_s16 = scalar_lea.hbm %s1882_s27, 128 }
 0x114   : > { %784 = vmatpush.bf16.msra.mxu3 %v1069_v58  ;;  %s818_s21 = sshll.u32 %s815_s10, 4  ;;  %s819_s21 = int_to_ptr.hbm [resolvable:$true] %s818_s21 }
 0x115   : > { %s1462_s30 = sshra.s32 %s819_s21, 4  ;;  %s1463_s30 = int_to_ptr.hbm [resolvable:$true] %s1462_s30 }
 0x116   : > { %743 = vmatpush.bf16.msra.mxu0 %v1041_v0  ;;  %s1464_s6 = scalar_lea.hbm %s1463_s30, 64  ;;  %p1469_p12 = scmp.lt.s32.totalorder %s1463_s30, %s1882_s27 }
 0x117   : > { %757 = vmatpush.bf16.msra.mxu1 %v1045_v1  ;;  %771 = vmatpush.bf16.msra.mxu2 %v1049_v2  ;;  %p1465_p7 = scmp.ne.s32.totalorder %s1463_s30, %s1464_s6  ;;  %p1470_p13 = scmp.lt.s32.totalorder %s1468_s16, %s1464_s6 }
 0x118   : > { %785 = vmatpush.bf16.msra.mxu3 %v1053_v3 }
 0x119   : > { %744 = vmatmul.bf16.vlgmr.msra.gmra.mxu0 %v1190_v4  ;;  %p1466_p10 = pnand %p1465_p7, %p1634_p8  ;;  %p1471_p1 = por %p1470_p13, %p1469_p12 }
 0x11a   : > { %758 = vmatmul.bf16.vlgmr.msra.gmra.mxu1 %v1190_v4  ;;  %772 = vmatmul.bf16.vlgmr.msra.gmra.mxu2 %v1190_v4 }
 0x11b   : > { %786 = vmatmul.bf16.vlgmr.msra.gmra.mxu3 %v1190_v4  ;;  %p1467_p11 = pneg %p1466_p10 }
 0x11d   : > { %p1472_p2 = pnand %p1471_p1, %p1467_p11 }
 0x196   : > { %v745_v8 = vpop.f32.mrf.mxu0 }
 0x197   : > { %v746_v9 = vadd.f32 %v745_v8, %v562_v6  ;;  %v759_v10 = vpop.f32.mrf.mxu1 }
 0x198   : > { %v760_v11 = vadd.f32 %v759_v10, %v563_v7 }
 0x199   : > { %792 = vst [vmem:[%s1727_s14] sm:$0xff] %v746_v9 }
 0x19a   : > { %793 = vst [vmem:[%s1727_s14 + $0x8] sm:$0xff] %v760_v11 }
 0x19d   : > { %v773_v14 = vpop.f32.mrf.mxu2 }
 0x19e   : > { %v774_v15 = vadd.f32 %v773_v14, %v564_v12  ;;  %v787_v16 = vpop.f32.mrf.mxu3  ;;  %v747_v17 = vpop.f32.mrf.mxu0 }
 0x19f   : > { %v788_v18 = vadd.f32 %v787_v16, %v565_v13  ;;  %v748_v19 = vadd.f32 %v747_v17, %v562_v6  ;;  %v761_v20 = vpop.f32.mrf.mxu1 }
 0x1a0   : > { %794 = vst [vmem:[%s1727_s14 + $0x10] sm:$0xff] %v774_v15  ;;  %v762_v21 = vadd.f32 %v761_v20, %v563_v7 }
 0x1a1   : > { %795 = vst [vmem:[%s1727_s14 + $0x18] sm:$0xff] %v788_v18 }
 0x1a2   : > { %796 = vst [vmem:[%s1727_s14 + $0x20] sm:$0xff] %v748_v19 }
 0x1a3   : > { %797 = vst [vmem:[%s1727_s14 + $0x28] sm:$0xff] %v762_v21 }
 0x1a5   : > { %v775_v22 = vpop.f32.mrf.mxu2 }
 0x1a6   : > { %v776_v23 = vadd.f32 %v775_v22, %v564_v12  ;;  %v789_v24 = vpop.f32.mrf.mxu3 }
 0x1a7   : > { %v790_v25 = vadd.f32 %v789_v24, %v565_v13 }
 0x1a8   : > { %798 = vst [vmem:[%s1727_s14 + $0x30] sm:$0xff] %v776_v23 }
 0x1a9   : > { %799 = vst [vmem:[%s1727_s14 + $0x38] sm:$0xff] %v790_v25 }
 0x1aa   : > { %1475 = shalt.err (!%p1472_p2)
}
 0x1ab   : > { %s1549_s1 = smov 512   ;;  %s1550_s5 = smov 1024  }
 0x1ac   : > { %s1551_s18 = smov 32  }
 0x1ad   : > { %1241 = dma.vmem_to_hbm [thread:$0]  (%p1634_p8), %s817_s7, 1024, %s819_s21, %s801_s26, %s1549_s1, %s1550_s5, %s1551_s18  }
 0x1ae PF: > { %s1884_s23 = sld [smem:[#allocation15_spill]]  ;;  %p1258_p4 = pnand %p949_p0, %p1638_p9 }
 0x1af   : > { %s1886_s9 = sld [smem:[#allocation16_spill]] }
 0x1b0   : > { %p1259_p6 = pneg %p1258_p4 }
 0x1b4   : > { %s833_s12 = sand.u32 1, %s1884_s23  }
 0x1b5   : > { %s834_s14 = scalar_lea.sflag [#allocation5], %s833_s12 }
 0x1b6   : > { %1513 = dma.done.wait (%p1259_p6), %s834_s14, 1024  }
 0x1b7   : > { %1515 = vsyncadd (%p1259_p6), %s834_s14, 4294966272  ;;  %s20_s23 = sadd.s32 1, %s1886_s9   ;;  %s1887_s24 = sld [smem:[#allocation20_spill]] }
 0x1b8   : > { %p17_p5 = scmp.ge.s32.totalorder %s20_s23, 4   ;;  %s1888_s28 = sld [smem:[#allocation19_spill]] }
 0x1b9   : > { %s1889_s18 = smov %s1522_s19  ;;  %s1890_s19 = smov %s1526_s20 }
 0x1ba   : > { %s1892_s21 = smov %s1534_s22  ;;  %19 = sbr.rel (!%p17_p5) target bundleno = 11 (0xb), region = 108 }
 0x1bd   : > { %s1891_s20 = smov %s1887_s24 }
 0x1be   : > { %s1893_s22 = smov %s1888_s28 }
 0x1bf   :  { %840 = vsyncpa [#allocation4], 1 }
 0x1c0   :  { %842 = vsyncpa [#allocation4 + $0x1], 1 }
 0x1c1   :  { %843 = vsyncpa [#allocation7], 1 }
 0x1c2   :  { %844 = vsyncpa [#allocation5], 1 }
 0x1c3   :  { %846 = vsyncpa [#allocation5 + $0x1], 1 }

</bundles_post_ra>
